<compile_context>
chip_gen: v7x
topology: tpu7x:2x2x1
jax: 0.10.0
libtpu: 0.0.40
codegen_flags: <defaults>
</compile_context>

<pallas_src>
import jax
import jax.numpy as jnp
from jax.experimental import pallas as pl
from jax.experimental.pallas import tpu as pltpu


def _msgc_kernel(x_ref, m_ref, b_ref, o_ref):
    # x_ref: (tb, N*in_dim) bf16      m_ref: (N*in_dim, N*out_dim) bf16 (resident)
    # b_ref: (1, N*out_dim)  f32      o_ref: (tb, N*out_dim) f32
    acc = jnp.dot(x_ref[...], m_ref[...], preferred_element_type=jnp.float32)
    o_ref[...] = jnp.maximum(acc + b_ref[...], 0.0).astype(o_ref.dtype)


def fold_operator(A, weights, *, K=2):
    """M = sum_k kron((A^k)^T, W_k), shape (N*in_dim, N*out_dim).
    Hoist/cache this across forward calls when A and the weights are static."""
    N = A.shape[0]
    in_dim, out_dim = weights.shape[-2], weights.shape[-1]
    a_pows = [jnp.eye(N, dtype=jnp.float32)]
    for _ in range(K):
        a_pows.append(a_pows[-1] @ A.astype(jnp.float32))
    a_stack = jnp.stack(a_pows)                                   # (K+1, N, N)
    m = jnp.einsum('knm,kdo->mdno', a_stack, weights.astype(jnp.float32))
    return m.reshape(N * in_dim, N * out_dim)


def _vmem_bytes(tb, N, in_dim, out_dim):
    x_blk = tb * N * in_dim * 2            # bf16 input tile
    o_blk = tb * N * out_dim * 4           # f32 output tile
    m_res = (N * in_dim) * (N * out_dim) * 2
    b_res = N * out_dim * 4
    acc = tb * N * out_dim * 4             # f32 accumulator
    return 2 * x_blk + 2 * o_blk + m_res + b_res + acc            # double-buffered I/O


def _pick_tb(BT, N, in_dim, out_dim, budget_bytes=24 << 20):
    rup8 = lambda v: ((v + 7) // 8) * 8
    tb = rup8(BT)
    # Prefer >=2 grid steps so the "parallel" axis can shard across v7x's 2 TCs.
    if tb >= 16:
        tb = rup8(pl.cdiv(BT, 2))
    while tb > 8 and _vmem_bytes(tb, N, in_dim, out_dim) > budget_bytes:
        tb = rup8(max(tb // 2, 8))
    return tb


def multi_scale_gc(x, A, weights, bias, *, K=2, tb=None):
    """x: [B, T, N, in_dim], A: [N, N], weights: [K+1, in_dim, out_dim], bias: [out_dim]."""
    B, T, N, in_dim = x.shape
    out_dim = weights.shape[-1]
    BT = B * T

    # Folded operator (cacheable across calls when A/weights are static).
    m = fold_operator(A, weights, K=K)
    # TODO(synk): fall back to a stacked-weights two-matmul kernel if M ever
    # exceeds comfortable VMEM residency for very large graphs.
    assert m.size * 2 <= (16 << 20), "folded operator too large for VMEM residency"
    m_bf16 = m.astype(jnp.bfloat16)

    bias_wide = jnp.tile(bias.astype(jnp.float32), N).reshape(1, N * out_dim)

    # Flat, already correctly-packed input: [BT, N*in_dim] (no transpose needed).
    x_flat = x.reshape(BT, N * in_dim).astype(jnp.bfloat16)

    if tb is None:
        tb = _pick_tb(BT, N, in_dim, out_dim)
    num_blocks = pl.cdiv(BT, tb)
    BT_pad = num_blocks * tb
    if BT_pad != BT:
        x_flat = jnp.pad(x_flat, ((0, BT_pad - BT), (0, 0)))

    vmem_req = _vmem_bytes(tb, N, in_dim, out_dim)
    vmem_limit = int(min(max(4 * vmem_req, 16 << 20), 48 << 20))   # fits v7x 64 MiB

    out_flat = pl.pallas_call(
        _msgc_kernel,
        out_shape=jax.ShapeDtypeStruct((BT_pad, N * out_dim), x.dtype),
        grid_spec=pltpu.PrefetchScalarGridSpec(
            num_scalar_prefetch=0,
            grid=(num_blocks,),
            in_specs=[
                pl.BlockSpec((tb, N * in_dim), lambda i: (i, 0)),             # x tile
                pl.BlockSpec((N * in_dim, N * out_dim), lambda i: (0, 0)),    # M (resident)
                pl.BlockSpec((1, N * out_dim), lambda i: (0, 0)),             # bias (resident)
            ],
            out_specs=pl.BlockSpec((tb, N * out_dim), lambda i: (i, 0)),      # lane-dense out
        ),
        compiler_params=pltpu.CompilerParams(
            dimension_semantics=("parallel",),
            vmem_limit_bytes=vmem_limit,
        ),
    )(x_flat, m_bf16, bias_wide)

    return out_flat[:BT].reshape(B, T, N, out_dim)


def multi_scale_gc_ref(x, A, weights, bias, *, K=2):
    """Pure-JAX f32 reference mirroring the PyTorch forward."""
    B, T, N, _ = x.shape
    a_pows = [jnp.eye(N, dtype=jnp.float32)]
    for _ in range(K):
        a_pows.append(a_pows[-1] @ A)
    x_r = x.reshape(B * T, N, -1)
    out = None
    for k in range(K + 1):
        h = jnp.matmul(x_r, weights[k])
        h = jnp.matmul(a_pows[k], h)
        out = h if out is None else out + h
    out = jax.nn.relu(out + bias)
    return out.reshape(B, T, N, -1)


if __name__ == "__main__":
    key = jax.random.PRNGKey(0)
    B, T, N = 2, 8, 16
    in_dim, out_dim, K = 4, 32, 2

    kx, ka, kw = jax.random.split(key, 3)
    x = jax.random.normal(kx, (B, T, N, in_dim), dtype=jnp.float32)
    A = jax.random.normal(ka, (N, N), dtype=jnp.float32) * 0.1
    weights = jax.random.normal(kw, (K + 1, in_dim, out_dim), dtype=jnp.float32)
    bias = jnp.zeros((out_dim,), dtype=jnp.float32)

    out = jax.block_until_ready(multi_scale_gc(x, A, weights, bias, K=K))
    ref = multi_scale_gc_ref(x, A, weights, bias, K=K)

    assert out.shape == (B, T, N, out_dim), out.shape
    # bf16 MXU operands with f32 accumulation/epilogue -> loose tolerance vs f32 ref.
    assert jnp.allclose(out, ref, atol=5e-2, rtol=5e-2), float(jnp.max(jnp.abs(out - ref)))

    print("KERNEL_OK")
</pallas_src>

<mosaic_0001>
module attributes {stable_mosaic.version = 11 : i64} {
  func.func @_msgc_kernel(%arg0: i32, %arg1: memref<8x64xbf16, #tpu.memory_space<vmem>>, %arg2: memref<64x512xbf16, #tpu.memory_space<vmem>>, %arg3: memref<1x512xf32, #tpu.memory_space<vmem>>, %arg4: memref<8x512xf32, #tpu.memory_space<vmem>>) attributes {dimension_semantics = [#tpu.dimension_semantics<parallel>], iteration_bounds = array<i64: 2>, scalar_prefetch = 0 : i64, scratch_operands = 0 : i64, tpu.core_type = #tpu.core_type<tc>, window_params = [{transform_indices = @transform_0, window_bounds = array<i64: 8, 64>}, {pipeline_mode = #tpu.pipeline_mode<synchronous>, transform_indices = @transform_1, window_bounds = array<i64: 64, 512>}, {pipeline_mode = #tpu.pipeline_mode<synchronous>, transform_indices = @transform_2, window_bounds = array<i64: 1, 512>}, {transform_indices = @transform_3, window_bounds = array<i64: 8, 512>}]} {
    %c0 = arith.constant 0 : index
    %c0_0 = arith.constant 0 : index
    %0 = vector.load %arg1[%c0, %c0_0] : memref<8x64xbf16, #tpu.memory_space<vmem>>, vector<8x64xbf16>
    %c0_1 = arith.constant 0 : index
    %c0_2 = arith.constant 0 : index
    %1 = vector.load %arg2[%c0_1, %c0_2] : memref<64x512xbf16, #tpu.memory_space<vmem>>, vector<64x512xbf16>
    %cst = arith.constant dense<0.000000e+00> : vector<8x512xf32>
    %2 = tpu.matmul %0, %1, %cst {dimension_numbers = #tpu.dot_dimension_numbers<[1], [0], [0], [1], [0, 0, 1, 1], [], []>} : vector<8x64xbf16>, vector<64x512xbf16>, vector<8x512xf32> -> vector<8x512xf32>
    %c0_3 = arith.constant 0 : index
    %c0_4 = arith.constant 0 : index
    %3 = vector.load %arg3[%c0_3, %c0_4] : memref<1x512xf32, #tpu.memory_space<vmem>>, vector<1x512xf32>
    %4 = vector.broadcast %3 : vector<1x512xf32> to vector<8x512xf32>
    %5 = arith.addf %2, %4 : vector<8x512xf32>
    %cst_5 = arith.constant 0.000000e+00 : f32
    %6 = vector.broadcast %cst_5 : f32 to vector<8x512xf32>
    %7 = arith.maximumf %5, %6 : vector<8x512xf32>
    %c0_6 = arith.constant 0 : index
    %c0_7 = arith.constant 0 : index
    %8 = vector.load %arg4[%c0_6, %c0_7] : memref<8x512xf32, #tpu.memory_space<vmem>>, vector<8x512xf32>
    tpu.vector_store %arg4[%c0_6, %c0_7], %7 {strides = array<i32>} : memref<8x512xf32, #tpu.memory_space<vmem>>, vector<8x512xf32>,
    return
  }
  func.func @transform_0(%arg0: i32) -> (i32, i32) {
    %c0_i32 = arith.constant 0 : i32
    %c0_i32_0 = arith.constant 0 : i32
    return %arg0, %c0_i32 : i32, i32
  }
  func.func @transform_1(%arg0: i32) -> (i32, i32) {
    %c0_i32 = arith.constant 0 : i32
    %c0_i32_0 = arith.constant 0 : i32
    %c0_i32_1 = arith.constant 0 : i32
    return %c0_i32, %c0_i32_0 : i32, i32
  }
  func.func @transform_2(%arg0: i32) -> (i32, i32) {
    %c0_i32 = arith.constant 0 : i32
    %c0_i32_0 = arith.constant 0 : i32
    %c0_i32_1 = arith.constant 0 : i32
    return %c0_i32, %c0_i32_0 : i32, i32
  }
  func.func @transform_3(%arg0: i32) -> (i32, i32) {
    %c0_i32 = arith.constant 0 : i32
    %c0_i32_0 = arith.constant 0 : i32
    return %arg0, %c0_i32 : i32, i32
  }
}

</mosaic_0001>

<bundles_post_ra>
// kernel: tpu_custom_call.1
= control target key start
LH: loop header
LB: loop body
LE: loop exit
PB: predicated region body
PF: predicated region fallthrough
CT: control target
= control target key end

     0   :  { %8 = vsyncpa [#allocation3], 0  ;;  %s987_s0 = inlined_call_operand.hbm [shape: bf16[16,64], index: 0, kind: input, shape index: {}]   ;;  %s988_s1 = inlined_call_operand.hbm [shape: bf16[64,512], index: 1, kind: input, shape index: {}]   ;;  %s989_s2 = inlined_call_operand.vmem [shape: f32[1,512], index: 2, kind: input, shape index: {}]   ;;  %s990_s3 = inlined_call_operand.hbm [shape: f32[16,512], index: 3, kind: output, shape index: {}]  }
   0x1   :  { %10 = vsyncpa [#allocation3 + $0x1], 0 }
   0x2   :  { %11 = vsyncpa [#allocation6], 0 }
   0x3   :  { %12 = vsyncpa [#allocation4], 0 }
   0x4   :  { %14 = vsyncpa [#allocation4 + $0x1], 0  ;;  %s784_s12 = smov 0   ;;  %s786_s13 = smov 0  }
   0x5   :  { %s788_s14 = smov 0   ;;  %s790_s15 = smov 0  }
   0x6 LB: > { %s805_s16 = sadd.s32 4294967295, %s756_s15   ;;  %s510_s17 = sadd.s32 4294967294, %s756_s15   ;;  %s756_s15 = sphi %s790_s15, %s1010_s15   ;;  %s752_s14 = sphi %s788_s14, %s1009_s14   ;;  %s748_s13 = sphi %s786_s13, %s1008_s13   ;;  %s744_s12 = sphi %s784_s12, %s1007_s12  }
   0x7   : > { %p40_p0 = scmp.ne.s32.totalorder %s748_s13, %s744_s12  ;;  %p991_p1 = scmp.eq.s32.totalorder %s805_s16, 0 }
   0x8   : > { %p112_p3 = scmp.eq.s32.totalorder %s510_s17, 1  ;;  %p511_p5 = scmp.ge.s32.totalorder %s756_s15, 1 }
   0x9   : > { %p814_p4 = por %p991_p1, %p40_p0  ;;  %p119_p7 = scmp.lt.s32.totalorder %s756_s15, 3 }
   0xa   : > { %p819_p6 = por %p112_p3, %p40_p0  ;;  %s758_s21 = smov [#allocation5]  }
   0xb   : > { %s994_s18 = scalar_select %p814_p4, 1, 0 }
   0xc   : > { %s995_s19 = scalar_select %p819_p6, 1, 0 }
   0xd   : > { %p824_p8 = pnand %p511_p5, %p119_p7  ;;  %s131_s22 = sshll.u32 %s758_s21, 4  ;;  %s828_s22 = int_to_ptr.vmem [resolvable:$true] %s131_s22 }
   0xe   : > { %s840_s24 = sadd.s32 1, %s756_s15   ;;  %s27_s25 = sadd.s32 1, %s752_s14 }
   0xf   : > { %s996_s20 = scalar_select %p824_p8, 1, 0 }
  0x10   : > { %p552_p9 = pneg %p824_p8  ;;  %s24_s26 = ssub.s32 %s756_s15, %s840_s24 }
  0x11   : > { %s628_s29 = scalar_lea.hbm %s988_s1, 2048 }
  0x12   : > { %p835_p11 = pnand %p552_p9, %p991_p1  ;;  %p629_p12 = scmp.ne.s32.totalorder %s988_s1, %s628_s29 }
  0x13   : > { %p635_p5 = scmp.lt.u32.totalorder %s628_s29, %s988_s1 }
  0x14   : > { %p630_p13 = pneg %p835_p11 }
  0x16   : > { %p631_p0 = pnand %p630_p13, %p629_p12 }
  0x18   : > { %p632_p3 = pneg %p631_p0 }
  0x1a   : > { %p637_p7 = pnand %p635_p5, %p632_p3 }
  0x1c   : > { %640 = shalt.err (!%p637_p7)
}
  0x1d   : > { %s641_s7 = scalar_lea.vmem %s828_s22, 2048  ;;  %p649_p2 = scmp.lt.s32.totalorder %s828_s22, %s828_s22 }
  0x1e   : > { %p642_p9 = scmp.ne.s32.totalorder %s828_s22, %s641_s7  ;;  %p650_p6 = scmp.lt.s32.totalorder %s641_s7, %s641_s7 }
  0x20   : > { %p644_p10 = pnand %p642_p9, %p630_p13  ;;  %p651_p4 = por %p650_p6, %p649_p2 }
  0x22   : > { %p645_p1 = pneg %p644_p10 }
  0x24   : > { %p652_p8 = pnand %p651_p4, %p645_p1 }
  0x26   : > { %655 = shalt.err (!%p652_p8)
}
  0x27   : > { %s759_s8 = smov 256   ;;  %s760_s9 = smov 16  }
  0x28   : > { %555 = dma.hbm_to_vmem [thread:$0]  (!%p835_p11), %s988_s1, 2048, %s828_s22, [#allocation6], %s759_s8, %s759_s8, %s760_s9  }
  0x29   : > { %p25_p2 = scmp.eq.s32.totalorder %s24_s26, 0  ;;  %p34_p1 = scmp.ne.s32.totalorder %s752_s14, %s748_s13 }
  0x2a   : > { %p35_p4 = scmp.eq.s32.totalorder %s756_s15, 0  ;;  %p565_p6 = scmp.lt.s32.totalorder %s756_s15, 2 }
  0x2b   : > { %s871_s17 = scalar_select %p25_p2, %s752_s14, %s27_s25  }
  0x2c   : > { %p36_p8 = por %p35_p4, %p34_p1  ;;  %p998_p10 = scmp.eq.s32.totalorder %s805_s16, 1 }
  0x2d   : > { %s148_s27 = sand.u32 1, %s752_s14   ;;  %s515_s28 = sshll.u32 %s756_s15, 6 }
  0x2e   : > { %p875_p12 = por %p998_p10, %p34_p1  ;;  %s514_s29 = sshll.u32 %s148_s27, 2 }
  0x2f   : > { %s884_s4 = scalar_lea.hbm %s987_s0, %s515_s28  ;;  %s152_s22 = scalar_lea.vmem [#allocation2], %s514_s29 }
  0x30   : > { %s159_s25 = sshll.u32 %s152_s22, 4  ;;  %p886_p11 = pnand %p565_p6, %p36_p8  ;;  %s890_s25 = int_to_ptr.vmem [resolvable:$true] %s159_s25 }
  0x31   : > { %s149_s5 = scalar_lea.sflag [#allocation3], %s148_s27  ;;  %s656_s6 = scalar_lea.hbm %s884_s4, 64 }
  0x32   : > { %p657_p13 = scmp.ne.s32.totalorder %s884_s4, %s656_s6  ;;  %p658_p0 = pneg %p886_p11 }
  0x33   : > { %s661_s9 = scalar_lea.hbm %s987_s0, 128  ;;  %p662_p7 = scmp.lt.u32.totalorder %s884_s4, %s987_s0 }
  0x34   : > { %p659_p3 = pnand %p658_p0, %p657_p13  ;;  %p663_p9 = scmp.lt.u32.totalorder %s661_s9, %s656_s6 }
  0x35   : > { %p665_p1 = scmp.lt.u32.totalorder %s656_s6, %s884_s4 }
  0x36   : > { %p660_p5 = pneg %p659_p3  ;;  %p664_p2 = por %p663_p9, %p662_p7 }
  0x38   : > { %p666_p4 = por %p665_p1, %p664_p2 }
  0x3a   : > { %p667_p6 = pnand %p666_p4, %p660_p5 }
  0x3c   : > { %670 = shalt.err (!%p667_p6)
}
  0x3d   : > { %s671_s27 = scalar_lea.vmem %s890_s25, 64  ;;  %s761_s28 = smov [#allocation2]  }
  0x3e   : > { %p672_p8 = scmp.ne.s32.totalorder %s890_s25, %s671_s27  ;;  %s676_s29 = sshll.u32 %s761_s28, 4  ;;  %s677_s29 = int_to_ptr.vmem [resolvable:$false] %s676_s29 }
  0x3f   : > { %s678_s23 = scalar_lea.vmem %s677_s29, 128  ;;  %p679_p3 = scmp.lt.s32.totalorder %s890_s25, %s677_s29 }
  0x40   : > { %p674_p10 = pnand %p672_p8, %p658_p0  ;;  %p680_p7 = scmp.lt.s32.totalorder %s678_s23, %s671_s27 }
  0x42   : > { %p675_p13 = pneg %p674_p10  ;;  %p681_p9 = por %p680_p7, %p679_p3 }
  0x44   : > { %p682_p2 = pnand %p681_p9, %p675_p13 }
  0x46   : > { %685 = shalt.err (!%p682_p2)
}
  0x47   : > { %559 = dma.hbm_to_vmem [thread:$0]  (!%p886_p11), %s884_s4, 64, %s890_s25, %s149_s5  }
  0x48   : > { %p1001_p5 = scmp.ne.s32.totalorder %s996_s20, 0 }
  0x49   : > { %s920_s30 = sand.u32 (!%p1001_p5), 1, %s748_s13   ;;  %p1002_p0 = scmp.ne.s32.totalorder (!%p1001_p5), %s994_s18, 0 }
  0x4a   : > { %168 = sbr.rel (%p1001_p5) target bundleno = 334 (0x14e), region = 32  ;;  %s517_s22 = sshll.u32 (!%p1001_p5), %s920_s30, 2 }
  0x4b   : > { %s171_s6 = scalar_lea.sflag (!%p1001_p5), [#allocation3], %s920_s30  ;;  %s924_s7 = scalar_lea.vmem (!%p1001_p5), [#allocation2], %s517_s22 }
  0x51   : > { %731 = dma.done.wait (%p1002_p0), %s171_s6, 64  }
  0x52   : > { %733 = vsyncadd (%p1002_p0), %s171_s6, 4294967232  ;;  %p1003_p11 = scmp.eq.s32.totalorder %s805_s16, 0 }
  0x54   : > { %735 = dma.done.wait (%p1003_p11), [#allocation6], 2048   ;;  %p1004_p1 = pmov %p1003_p11 }
  0x55   : > { %v762_v0 = vmov 0   ;;  %v604_v1 = vld [vmem:[#allocation5 + $0x4] ss:$16 sps:$4 sm:$0xff]   ;;  %v606_v2 = vld [vmem:[#allocation5 + $0xc] ss:$16 sps:$4 sm:$0xff]   ;;  %vm321_vm0 = vcmask 523264   ;;  %v221_v18 = vlaneseq }
  0x56   : > { %737 = vsyncadd (%p1004_p1), [#allocation6], 4294965248  ;;  %357 = vmatprep.mubr.bf16.mxu0 %v762_v0  ;;  %398 = vmatprep.mubr.bf16.mxu1 %v762_v0  ;;  %v608_v3 = vld [vmem:[#allocation5] ss:$16 sps:$4 sm:$0xff]   ;;  %v609_v4 = vld [vmem:[#allocation5 + $0x8] ss:$16 sps:$4 sm:$0xff]  }
  0x57   : > { %325 = vmatprep.subr.bf16.mxu0 %v604_v1  ;;  %366 = vmatprep.subr.bf16.mxu1 %v606_v2  ;;  %v610_v5 = vld [vmem:[#allocation5 + $0x24] ss:$16 sps:$4 sm:$0xff]   ;;  %v612_v6 = vld [vmem:[#allocation5 + $0x2c] ss:$16 sps:$4 sm:$0xff]   ;;  %v614_v7 = vld [vmem:[#allocation5 + $0x20] ss:$16 sps:$4 sm:$0xff]  }
  0x58   : > { %326 = vmatpush1.bf16.msra.mxu0 %v608_v3  ;;  %367 = vmatpush1.bf16.msra.mxu1 %v609_v4  ;;  %v615_v8 = vld [vmem:[#allocation5 + $0x28] ss:$16 sps:$4 sm:$0xff]   ;;  %v616_v9 = vld [vmem:[#allocation5 + $0x44] ss:$16 sps:$4 sm:$0xff]   ;;  %v618_v10 = vld [vmem:[#allocation5 + $0x4c] ss:$16 sps:$4 sm:$0xff]  }
  0x59   : > { %327 = vmatprep.subr.bf16.mxu0 %v610_v5  ;;  %368 = vmatprep.subr.bf16.mxu1 %v612_v6  ;;  %v620_v11 = vld [vmem:[#allocation5 + $0x40] ss:$16 sps:$4 sm:$0xff]   ;;  %v621_v12 = vld [vmem:[#allocation5 + $0x48] ss:$16 sps:$4 sm:$0xff]   ;;  %v622_v13 = vld [vmem:[#allocation5 + $0x64] ss:$16 sps:$4 sm:$0xff]  }
  0x5a   : > { %v624_v14 = vld [vmem:[#allocation5 + $0x6c] ss:$16 sps:$4 sm:$0xff]   ;;  %v626_v15 = vld [vmem:[#allocation5 + $0x60] ss:$16 sps:$4 sm:$0xff]   ;;  %v627_v16 = vld [vmem:[#allocation5 + $0x68] ss:$16 sps:$4 sm:$0xff]  }
  0x5b   : > { %v202_v17 = vld [vmem:[%s924_s7] sm:$0xf]  ;;  %v222_v19 = vshrl.u32 %v221_v18, 7  ;;  %s519_s4 = sshll.u32 %s920_s30, 5  ;;  %s543_s25 = sshll.u32 %s805_s16, 9 }
  0x5c   : > { %328 = vmatpush1.bf16.msra.mxu0 %v614_v7  ;;  %369 = vmatpush1.bf16.msra.mxu1 %v615_v8  ;;  %v219_v22 = vld [vmem:[%s989_s2] sm:$0xf]  ;;  %s200_s26 = scalar_lea.vmem [#allocation7], %s519_s4  ;;  %s943_s10 = scalar_lea.hbm %s990_s3, %s543_s25 }
  0x5d   : > { %329 = vmatprep.subr.bf16.mxu0 %v616_v9  ;;  %370 = vmatprep.subr.bf16.mxu1 %v618_v10  ;;  %v223_v20 = vsub.s32 0, %v222_v19  ;;  %v231_v21 = vsub.s32 2, %v222_v19  ;;  %v227_v23 = vsub.s32 1, %v222_v19  ;;  %v235_v24 = vsub.s32 3, %v222_v19  ;;  %s430_s5 = sshll.u32 %s200_s26, 4  ;;  %s416_s16 = scalar_lea.sflag [#allocation4], %s920_s30  ;;  %s945_s5 = int_to_ptr.vmem [resolvable:$true] %s430_s5 }
  0x5e   : > { %s686_s11 = scalar_lea.vmem %s945_s5, 512  ;;  %s763_s27 = smov [#allocation7]  }
  0x5f   : > { %v224_v25 = vrot.slane %v219_v22, %v223_v20  ;;  %v232_v26 = vrot.slane %v219_v22, %v231_v21  ;;  %v228_v27 = vrot.slane %v219_v22, %v227_v23  ;;  %v236_v28 = vrot.slane %v219_v22, %v235_v24  ;;  %p687_p4 = scmp.ne.s32.totalorder %s945_s5, %s686_s11  ;;  %s690_s28 = sshll.u32 %s763_s27, 4  ;;  %s691_s28 = int_to_ptr.vmem [resolvable:$false] %s690_s28 }
  0x60   : > { %330 = vmatpush1.bf16.msra.mxu0 %v620_v11  ;;  %371 = vmatpush1.bf16.msra.mxu1 %v621_v12  ;;  %s692_s29 = scalar_lea.vmem %s691_s28, 1024  ;;  %p693_p10 = scmp.lt.s32.totalorder %s945_s5, %s691_s28 }
  0x61   : > { %331 = vmatprep.subr.bf16.mxu0 %v622_v13  ;;  %372 = vmatprep.subr.bf16.mxu1 %v624_v14  ;;  %p688_p6 = pnand %p687_p4, %p875_p12  ;;  %p694_p13 = scmp.lt.s32.totalorder %s692_s29, %s686_s11 }
  0x63   : > { %p689_p8 = pneg %p688_p6  ;;  %p695_p3 = por %p694_p13, %p693_p10 }
  0x64   : > { %332 = vmatpush1.bf16.msra.mxu0 %v626_v15  ;;  %373 = vmatpush1.bf16.msra.mxu1 %v627_v16 }
  0x65   : > { %p696_p7 = pnand %p695_p3, %p689_p8 }
  0x67   : > { %536 = vmatmul.mubr.msk.bf16.vlgmr.msra.gmra.mrb[0].mxu0 %vm321_vm0, %v202_v17  ;;  %537 = vmatmul.mubr.msk.bf16.vlgmr.msra.gmra.mrb[0].mxu1 %vm321_vm0, %v202_v17 }
 0x13a   : > { %v359_v29 = vpop.f32.mrb[0].mxu0  ;;  %v400_v30 = vpop.f32.mrb[0].mxu1 }
 0x13b   : > { %v360_v31 = vadd.f32 %v359_v29, %v224_v25  ;;  %v401_v32 = vadd.f32 %v400_v30, %v232_v26  ;;  %v361_v33 = vpop.f32.mrb[1].mxu0  ;;  %v402_v34 = vpop.f32.mrb[1].mxu1 }
 0x13c   : > { %v362_v35 = vadd.f32 %v361_v33, %v228_v27  ;;  %v403_v36 = vadd.f32 %v402_v34, %v236_v28  ;;  %v363_v37 = vpop.f32.mrb[2].mxu0  ;;  %v404_v38 = vpop.f32.mrb[2].mxu1 }
 0x13d   : > { %v407_v39 = vmax.f32 %v360_v31, 0.0  ;;  %v409_v40 = vmax.f32 %v401_v32, 0.0  ;;  %v364_v41 = vpop.f32.mrb[3].mxu0  ;;  %v405_v42 = vpop.f32.mrb[3].mxu1 }
 0x13e   : > { %v408_v43 = vmax.f32 %v362_v35, 0.0  ;;  %v410_v44 = vmax.f32 %v403_v36, 0.0 }
 0x13f   : > { %411 = vst [vmem:[%s200_s26] sm:$0xff] %v407_v39  ;;  %413 = vst [vmem:[%s200_s26 + $0x10] sm:$0xff] %v409_v40 }
 0x140   : > { %412 = vst [vmem:[%s200_s26 + $0x8] sm:$0xff] %v408_v43  ;;  %414 = vst [vmem:[%s200_s26 + $0x18] sm:$0xff] %v410_v44 }
 0x141   : > { %699 = shalt.err (!%p696_p7)
}
 0x142   : > { %s700_s23 = scalar_lea.hbm %s943_s10, 512  ;;  %s704_s6 = scalar_lea.hbm %s990_s3, 1024 }
 0x143   : > { %p701_p9 = scmp.ne.s32.totalorder %s943_s10, %s700_s23  ;;  %p705_p0 = scmp.lt.u32.totalorder %s943_s10, %s990_s3 }
 0x144   : > { %p706_p11 = scmp.lt.u32.totalorder %s704_s6, %s700_s23  ;;  %p708_p4 = scmp.lt.u32.totalorder %s700_s23, %s943_s10 }
 0x145   : > { %p702_p2 = pnand %p701_p9, %p875_p12 }
 0x146   : > { %p707_p1 = por %p706_p11, %p705_p0 }
 0x147   : > { %p703_p5 = pneg %p702_p2 }
 0x148   : > { %p709_p6 = por %p708_p4, %p707_p1 }
 0x14a   : > { %p710_p8 = pnand %p709_p6, %p703_p5 }
 0x14c   : > { %713 = shalt.err (!%p710_p8)
}
 0x14d   : > { %550 = dma.vmem_to_hbm [thread:$0]  (%p875_p12), %s945_s5, 512, %s943_s10, %s416_s16  }
 0x14e PF: > { %s442_s20 = sand.u32 1, %s744_s12   ;;  %p1005_p10 = scmp.ne.s32.totalorder %s995_s19, 0 }
 0x14f   : > { %p1006_p13 = scmp.ge.s32.totalorder %s756_s15, 2  ;;  %s443_s4 = scalar_lea.sflag [#allocation4], %s442_s20 }
 0x151   : > { %p561_p3 = pnand %p1006_p13, %p1005_p10 }
 0x153   : > { %739 = dma.done.wait (!%p561_p3), %s443_s4, 512  }
 0x154   : > { %741 = vsyncadd (!%p561_p3), %s443_s4, 4294966784  ;;  %p17_p7 = scmp.ge.s32.totalorder %s840_s24, 4   ;;  %s1007_s12 = smov %s748_s13 }
 0x155   : > { %s1008_s13 = smov %s752_s14  ;;  %s1009_s14 = smov %s871_s17 }
 0x156   : > { %s1010_s15 = smov %s840_s24  ;;  %19 = sbr.rel (!%p17_p7) target bundleno = 6 (0x6), region = 81 }
 0x15d   :  { %448 = vsyncpa [#allocation3], 1 }
 0x15e   :  { %450 = vsyncpa [#allocation3 + $0x1], 1 }
 0x15f   :  { %451 = vsyncpa [#allocation6], 1 }
 0x160   :  { %452 = vsyncpa [#allocation4], 1 }
 0x161   :  { %454 = vsyncpa [#allocation4 + $0x1], 1 }

</bundles_post_ra>
